<compile_context>
chip_gen: v7x
topology: tpu7x:2x2x1
jax: 0.10.0
libtpu: 0.0.40
codegen_flags: <defaults>
</compile_context>

<pallas_src>
import jax
import jax.numpy as jnp
from jax.experimental import pallas as pl
from jax.experimental.pallas import tpu as pltpu


def _round_up(x: int, m: int) -> int:
    return (x + m - 1) // m * m


def _sublane(dtype) -> int:
    # Sub-32-bit dtypes pack along sublanes: 8 rows for f32, 16 for bf16, 32 for int8.
    return max(8, 32 // jnp.dtype(dtype).itemsize)


def _vmem_budget_bytes() -> int:
    cap = 64 * 1024 * 1024  # conservative default: v7x per-TC physical VMEM
    try:
        cap = int(getattr(pltpu.get_tpu_info(), "vmem_capacity_bytes", cap))
    except Exception:
        pass
    # Leave ~25% headroom for Mosaic internal scratch / double-buffering bookkeeping.
    return (cap * 3) // 4


# --------------------------- kernels ---------------------------------------


def _linear_fullk_kernel(x_ref, w_ref, b_ref, o_ref):
    # x:(tm, K) @ w:(K, tn) canonical orientation -> MXU direct, f32 accumulation.
    acc = jax.lax.dot_general(
        x_ref[...], w_ref[...],
        dimension_numbers=(((1,), (0,)), ((), ())),
        preferred_element_type=jnp.float32,
    )
    o_ref[...] = (acc + b_ref[...]).astype(o_ref.dtype)


def _linear_ksplit_out_acc_kernel(x_ref, w_ref, b_ref, o_ref):
    # f32 output doubles as the accumulator (resident across the K grid axis).
    k = pl.program_id(2)

    @pl.when(k == 0)
    def _():
        o_ref[...] = jnp.broadcast_to(b_ref[...], o_ref.shape)

    o_ref[...] += jax.lax.dot_general(
        x_ref[...], w_ref[...],
        dimension_numbers=(((1,), (0,)), ((), ())),
        preferred_element_type=jnp.float32,
    )


def _linear_ksplit_scratch_kernel(x_ref, w_ref, b_ref, o_ref, acc_ref):
    k = pl.program_id(2)

    @pl.when(k == 0)
    def _():
        acc_ref[...] = jnp.broadcast_to(b_ref[...], acc_ref.shape)

    acc_ref[...] += jax.lax.dot_general(
        x_ref[...], w_ref[...],
        dimension_numbers=(((1,), (0,)), ((), ())),
        preferred_element_type=jnp.float32,
    )

    @pl.when(k == pl.num_programs(2) - 1)
    def _():
        o_ref[...] = acc_ref[...].astype(o_ref.dtype)


# --------------------------- layer -----------------------------------------


class PallasValueLayer:
    """ValueLayer forward: y = x @ W^T + b, with weight prepared once at init.

    weight: (N, D) as stored by nn.Linear; bias: (N,).  Pass
    compute_dtype=jnp.bfloat16 to run the MXU at bf16 peak (f32 accumulation).
    """

    def __init__(self, weight, bias, *, compute_dtype=None,
                 tn: int = 512, tk: int = 512, full_k_max: int = 2048):
        N, D = weight.shape
        assert bias.shape == (N,)
        self.d_model = int(D)
        self.n_out = int(N)
        self.compute_dtype = (jnp.dtype(compute_dtype) if compute_dtype is not None
                              else jnp.dtype(weight.dtype))

        # Weight-side tile plan (fixed at init).
        self.tn = min(tn, _round_up(N, 128))
        d_pad128 = _round_up(D, 128)
        if d_pad128 <= full_k_max:
            # Full-K: single K block, drop the K grid axis and the accumulator.
            self.tk = d_pad128
            self.split_k = False
        else:
            self.tk = min(tk, d_pad128)
            self.split_k = True
        self.Np = _round_up(N, self.tn)
        self.Dp = _round_up(D, self.tk)

        # One-time weight prep: (N, D) -> (D, N), pad to (Dp, Np), cast.
        w_t = jnp.asarray(weight).T
        if (self.Dp, self.Np) != (D, N):
            w_t = jnp.pad(w_t, ((0, self.Dp - D), (0, self.Np - N)))
        self.w_t = w_t.astype(self.compute_dtype)

        b = jnp.asarray(bias, dtype=jnp.float32).reshape(1, N)
        if self.Np != N:
            b = jnp.pad(b, ((0, 0), (0, self.Np - N)))
        self.bias = b

    def __call__(self, x, *, tm: int | None = None):
        B, S, D = x.shape
        assert D == self.d_model
        M = B * S
        out_dtype = x.dtype

        in_it = jnp.dtype(self.compute_dtype).itemsize
        out_it = jnp.dtype(out_dtype).itemsize
        sub = max(_sublane(self.compute_dtype), _sublane(out_dtype))

        if tm is None:
            tm = 1024 if M >= 1024 else 512
        tm = max(sub, min(_round_up(tm, sub), _round_up(M, sub)))

        tn, tk = self.tn, self.tk
        use_scratch = self.split_k and jnp.dtype(out_dtype) != jnp.dtype(jnp.float32)
        budget = _vmem_budget_bytes()

        def footprint(tm_):
            fb = 2 * (tm_ * tk + tk * tn) * in_it   # x & w tiles, double-buffered
            fb += 2 * tm_ * tn * out_it             # output tile, double-buffered
            fb += 2 * tn * 4                        # bias tile (f32)
            if use_scratch:
                fb += tm_ * tn * 4                  # resident f32 accumulator
            return fb

        # Safety net: shrink tm if the tile set would blow the per-generation budget.
        while footprint(tm) > budget and tm > sub:
            tm = max(sub, tm // 2)

        Mp = _round_up(M, tm)
        gm, gn = Mp // tm, self.Np // tn

        # Per-call x prep (runtime data; weight was prepared at init).
        x2d = x.reshape(M, D)
        if jnp.dtype(x2d.dtype) != self.compute_dtype:
            x2d = x2d.astype(self.compute_dtype)
        if (Mp, self.Dp) != (M, D):
            x2d = jnp.pad(x2d, ((0, Mp - M), (0, self.Dp - D)))

        # NOTE(v7x): keep gm * gn >= 2 where possible so both TensorCores get work.
        # TODO(synk): sweep pipeline_mode=pl.Buffered(3) on x/w specs if profiling
        # shows exposed DMA in the small-M / huge-W regime.
        if not self.split_k:
            grid = (gm, gn)
            in_specs = [
                pl.BlockSpec((tm, tk), lambda i, j: (i, 0)),    # x (full K)
                pl.BlockSpec((tk, tn), lambda i, j: (0, j)),    # W^T (K, N)
                pl.BlockSpec((1, tn), lambda i, j: (0, j)),     # bias
            ]
            out_spec = pl.BlockSpec((tm, tn), lambda i, j: (i, j))
            kernel = _linear_fullk_kernel
            scratch = []
            dims = ("parallel", "parallel")
        else:
            gk = self.Dp // tk
            grid = (gm, gn, gk)
            in_specs = [
                pl.BlockSpec((tm, tk), lambda i, j, k: (i, k)),
                pl.BlockSpec((tk, tn), lambda i, j, k: (k, j)),
                pl.BlockSpec((1, tn), lambda i, j, k: (0, j)),
            ]
            out_spec = pl.BlockSpec((tm, tn), lambda i, j, k: (i, j))
            if use_scratch:
                kernel = _linear_ksplit_scratch_kernel
                scratch = [pltpu.VMEM((tm, tn), jnp.float32)]
            else:
                kernel = _linear_ksplit_out_acc_kernel
                scratch = []
            dims = ("parallel", "parallel", "arbitrary")

        # Actual streamed traffic: W re-read gm times, x re-read gn times.
        bytes_accessed = (gn * Mp * self.Dp * in_it
                          + gm * self.Dp * self.Np * in_it
                          + Mp * self.Np * out_it
                          + self.Np * 4)

        out = pl.pallas_call(
            kernel,
            out_shape=jax.ShapeDtypeStruct((Mp, self.Np), out_dtype),
            grid_spec=pltpu.PrefetchScalarGridSpec(
                num_scalar_prefetch=0,
                grid=grid,
                in_specs=in_specs,
                out_specs=out_spec,
                scratch_shapes=scratch,
            ),
            compiler_params=pltpu.CompilerParams(
                dimension_semantics=dims,
                vmem_limit_bytes=int(budget),
            ),
            cost_estimate=pl.CostEstimate(
                flops=2 * M * self.n_out * self.d_model,
                transcendentals=0,
                bytes_accessed=int(bytes_accessed),
            ),
        )(x2d, self.w_t, self.bias)

        if (Mp, self.Np) != (M, self.n_out):
            out = out[:M, :self.n_out]
        return out.reshape(B, S, self.n_out)


if __name__ == "__main__":
    # Small shapes consistent with ValueLayer(d_model, n_heads)
    d_model, n_heads, batch, seq = 32, 4, 2, 8

    key = jax.random.PRNGKey(0)
    kx, kw, kb = jax.random.split(key, 3)

    x = jax.random.normal(kx, (batch, seq, d_model), dtype=jnp.float32)
    weight = jax.random.normal(kw, (d_model * n_heads, d_model), dtype=jnp.float32) * 0.02
    bias = jax.random.normal(kb, (d_model * n_heads,), dtype=jnp.float32) * 0.02

    y_ref = jnp.einsum("bsd,nd->bsn", x, weight) + bias

    # f32 compute (matches nn.Linear default dtype).
    layer = PallasValueLayer(weight, bias)
    y = jax.block_until_ready(layer(x))
    assert y.shape == (batch, seq, d_model * n_heads)
    assert jnp.allclose(y, y_ref, atol=1e-5, rtol=1e-5)

    # bf16 MXU path (what a bf16 model would use); f32 accumulation, looser tolerance.
    layer_bf16 = PallasValueLayer(weight, bias, compute_dtype=jnp.bfloat16)
    y_bf16 = jax.block_until_ready(layer_bf16(x))
    assert jnp.allclose(y_bf16, y_ref, atol=2e-2, rtol=2e-2)

    print("KERNEL_OK")
</pallas_src>

<mosaic_0001>
module attributes {stable_mosaic.version = 11 : i64} {
  func.func @_linear_fullk_kernel(%arg0: i32, %arg1: i32, %arg2: memref<16x128xf32, #tpu.memory_space<vmem>>, %arg3: memref<128x128xf32, #tpu.memory_space<vmem>>, %arg4: memref<1x128xf32, #tpu.memory_space<vmem>>, %arg5: memref<16x128xf32, #tpu.memory_space<vmem>>) attributes {dimension_semantics = [#tpu.dimension_semantics<parallel>, #tpu.dimension_semantics<parallel>], iteration_bounds = array<i64: 1, 1>, scalar_prefetch = 0 : i64, scratch_operands = 0 : i64, tpu.core_type = #tpu.core_type<tc>, window_params = [{transform_indices = @transform_0, window_bounds = array<i64: 16, 128>}, {transform_indices = @transform_1, window_bounds = array<i64: 128, 128>}, {transform_indices = @transform_2, window_bounds = array<i64: 1, 128>}, {transform_indices = @transform_3, window_bounds = array<i64: 16, 128>}]} {
    %c0 = arith.constant 0 : index
    %c0_0 = arith.constant 0 : index
    %0 = vector.load %arg2[%c0, %c0_0] : memref<16x128xf32, #tpu.memory_space<vmem>>, vector<16x128xf32>
    %c0_1 = arith.constant 0 : index
    %c0_2 = arith.constant 0 : index
    %1 = vector.load %arg3[%c0_1, %c0_2] : memref<128x128xf32, #tpu.memory_space<vmem>>, vector<128x128xf32>
    %cst = arith.constant dense<0.000000e+00> : vector<16x128xf32>
    %2 = tpu.matmul %0, %1, %cst {dimension_numbers = #tpu.dot_dimension_numbers<[1], [0], [0], [1], [0, 0, 1, 1], [], []>} : vector<16x128xf32>, vector<128x128xf32>, vector<16x128xf32> -> vector<16x128xf32>
    %c0_3 = arith.constant 0 : index
    %c0_4 = arith.constant 0 : index
    %3 = vector.load %arg4[%c0_3, %c0_4] : memref<1x128xf32, #tpu.memory_space<vmem>>, vector<1x128xf32>
    %4 = vector.broadcast %3 : vector<1x128xf32> to vector<16x128xf32>
    %5 = arith.addf %2, %4 : vector<16x128xf32>
    %c0_5 = arith.constant 0 : index
    %c0_6 = arith.constant 0 : index
    %6 = vector.load %arg5[%c0_5, %c0_6] : memref<16x128xf32, #tpu.memory_space<vmem>>, vector<16x128xf32>
    tpu.vector_store %arg5[%c0_5, %c0_6], %5 {strides = array<i32>} : memref<16x128xf32, #tpu.memory_space<vmem>>, vector<16x128xf32>,
    return
  }
  func.func @transform_0(%arg0: i32, %arg1: i32) -> (i32, i32) {
    %c0_i32 = arith.constant 0 : i32
    %c0_i32_0 = arith.constant 0 : i32
    return %arg0, %c0_i32 : i32, i32
  }
  func.func @transform_1(%arg0: i32, %arg1: i32) -> (i32, i32) {
    %c0_i32 = arith.constant 0 : i32
    %c0_i32_0 = arith.constant 0 : i32
    return %c0_i32, %arg1 : i32, i32
  }
  func.func @transform_2(%arg0: i32, %arg1: i32) -> (i32, i32) {
    %c0_i32 = arith.constant 0 : i32
    %c0_i32_0 = arith.constant 0 : i32
    return %c0_i32, %arg1 : i32, i32
  }
  func.func @transform_3(%arg0: i32, %arg1: i32) -> (i32, i32) {
    %c0_i32 = arith.constant 0 : i32
    return %arg0, %arg1 : i32, i32
  }
}

</mosaic_0001>

<bundles_post_ra>
// kernel: tpu_custom_call.1
= control target key start
LH: loop header
LB: loop body
LE: loop exit
PB: predicated region body
PF: predicated region fallthrough
CT: control target
= control target key end

     0   :  { %8 = vsyncpa [#allocation3], 0  ;;  %s399_s0 = inlined_call_operand.hbm [shape: f32[16,128], index: 0, kind: input, shape index: {}]   ;;  %s400_s1 = inlined_call_operand.hbm [shape: f32[128,128], index: 1, kind: input, shape index: {}]   ;;  %s401_s2 = inlined_call_operand.vmem [shape: f32[1,128], index: 2, kind: input, shape index: {}]   ;;  %s402_s3 = inlined_call_operand.hbm [shape: f32[16,128], index: 3, kind: output, shape index: {}]  }
   0x1   :  { %9 = vsyncpa [#allocation6], 0 }
   0x2   :  { %10 = vsyncpa [#allocation4], 0  ;;  %s326_s12 = smov [#allocation2]   ;;  %s254_s16 = scalar_lea.hbm %s399_s0, 256 }
   0x3   :  { %s16_s13 = sshll.u32 %s326_s12, 4  ;;  %p255_p0 = scmp.ne.s32.totalorder %s399_s0, %s254_s16  ;;  %s17_s13 = int_to_ptr.vmem [resolvable:$true] %s16_s13 }
   0x4   :  { %p258_p1 = scmp.lt.u32.totalorder %s254_s16, %s399_s0 }
   0x6   :  { %p260_p2 = pnand %p258_p1, %p255_p0 }
   0x8   :  { %263 = shalt.err (!%p260_p2)
}
   0x9   :  { %s264_s21 = scalar_lea.vmem %s17_s13, 256  ;;  %p269_p4 = scmp.lt.s32.totalorder %s17_s13, %s17_s13 }
   0xa   :  { %p265_p3 = scmp.ne.s32.totalorder %s17_s13, %s264_s21  ;;  %p270_p5 = scmp.lt.s32.totalorder %s264_s21, %s264_s21 }
   0xc   :  { %p271_p6 = por %p270_p5, %p269_p4 }
   0xe   :  { %p272_p7 = pnand %p271_p6, %p265_p3 }
  0x10   :  { %275 = shalt.err (!%p272_p7)
}
  0x11   :  { %s327_s22 = smov 128   ;;  %s328_s23 = smov 8  }
  0x12   :  { %22 = dma.hbm_to_vmem [thread:$0]  %s399_s0, 256, %s17_s13, [#allocation3], %s327_s22, %s327_s22, %s328_s23  }
  0x13   :  { %s329_s26 = smov [#allocation5]   ;;  %s276_s30 = scalar_lea.hbm %s400_s1, 2048 }
  0x14   :  { %s28_s27 = sshll.u32 %s329_s26, 4  ;;  %p277_p8 = scmp.ne.s32.totalorder %s400_s1, %s276_s30  ;;  %s29_s27 = int_to_ptr.vmem [resolvable:$true] %s28_s27 }
  0x15   :  { %p280_p9 = scmp.lt.u32.totalorder %s276_s30, %s400_s1 }
  0x17   :  { %p282_p10 = pnand %p280_p9, %p277_p8 }
  0x19   :  { %285 = shalt.err (!%p282_p10)
}
  0x1a   :  { %s286_s8 = scalar_lea.vmem %s29_s27, 2048  ;;  %p291_p12 = scmp.lt.s32.totalorder %s29_s27, %s29_s27 }
  0x1b   :  { %p287_p11 = scmp.ne.s32.totalorder %s29_s27, %s286_s8  ;;  %p292_p13 = scmp.lt.s32.totalorder %s286_s8, %s286_s8 }
  0x1d   :  { %p293_p0 = por %p292_p13, %p291_p12 }
  0x1f   :  { %p294_p1 = pnand %p293_p0, %p287_p11 }
  0x21   :  { %297 = shalt.err (!%p294_p1)
}
  0x22   :  { %34 = dma.hbm_to_vmem [thread:$0]  %s400_s1, 2048, %s29_s27, [#allocation6], %s327_s22, %s327_s22, %s328_s23  }
  0x23   :  { %320 = dma.done.wait [#allocation3], 256  }
  0x24   :  { %321 = vsyncadd [#allocation3], 4294967040 }
  0x25   :  { %322 = dma.done.wait [#allocation6], 2048  }
  0x26   :  { %323 = vsyncadd [#allocation6], 4294965248  ;;  %v45_v0 = vld [vmem:[#allocation5] sm:$0xff]  ;;  %v46_v1 = vld [vmem:[#allocation5 + $0x8] sm:$0xff]  ;;  %s330_s11 = smov [#allocation7]  }
  0x27   :  { %v47_v2 = vld [vmem:[#allocation5 + $0x10] sm:$0xff]  ;;  %v217_v3 = vpack.c.bf16 %v46_v1, %v45_v0  ;;  %v48_v4 = vld [vmem:[#allocation5 + $0x18] sm:$0xff]  ;;  %v49_v6 = vld [vmem:[#allocation5 + $0x20] sm:$0xff]  ;;  %s150_s12 = sshll.u32 %s330_s11, 4  ;;  %s151_s12 = int_to_ptr.vmem [resolvable:$true] %s150_s12 }
  0x28   :  { %v221_v5 = vpack.c.bf16 %v48_v4, %v47_v2  ;;  %v50_v7 = vld [vmem:[#allocation5 + $0x28] sm:$0xff]  ;;  %v43_v9 = vld [vmem:[#allocation2] sm:$0xff]  ;;  %v52_v11 = vld [vmem:[#allocation5 + $0x38] sm:$0xff]  ;;  %s298_s13 = scalar_lea.vmem %s151_s12, 256  ;;  %p303_p3 = scmp.lt.s32.totalorder %s151_s12, %s151_s12 }
  0x29   :  { %218 = vmatprep.subr.bf16.mxu0 %v217_v3  ;;  %v225_v8 = vpack.c.bf16 %v50_v7, %v49_v6  ;;  %v51_v10 = vld [vmem:[#allocation5 + $0x30] sm:$0xff]  ;;  %214 = vmatprep.mubr.f32.mxu0 %v43_v9  ;;  %v53_v13 = vld [vmem:[#allocation5 + $0x40] sm:$0xff]  ;;  %v54_v14 = vld [vmem:[#allocation5 + $0x48] sm:$0xff]  ;;  %p299_p2 = scmp.ne.s32.totalorder %s151_s12, %s298_s13  ;;  %p304_p4 = scmp.lt.s32.totalorder %s298_s13, %s298_s13 }
  0x2a   :  { %220 = vmatpush3.bf16.msra.mxu0 %v217_v3  ;;  %v229_v12 = vpack.c.bf16 %v52_v11, %v51_v10  ;;  %v233_v15 = vpack.c.bf16 %v54_v14, %v53_v13  ;;  %v55_v16 = vld [vmem:[#allocation5 + $0x50] sm:$0xff]  ;;  %v56_v17 = vld [vmem:[#allocation5 + $0x58] sm:$0xff]  ;;  %v57_v19 = vld [vmem:[#allocation5 + $0x60] sm:$0xff] }
  0x2b   :  { %222 = vmatprep.subr.bf16.mxu0 %v221_v5  ;;  %v237_v18 = vpack.c.bf16 %v56_v17, %v55_v16  ;;  %v58_v20 = vld [vmem:[#allocation5 + $0x68] sm:$0xff]  ;;  %v59_v22 = vld [vmem:[#allocation5 + $0x70] sm:$0xff]  ;;  %v60_v23 = vld [vmem:[#allocation5 + $0x78] sm:$0xff]  ;;  %p305_p5 = por %p304_p4, %p303_p3 }
  0x2c   :  { %v241_v21 = vpack.c.bf16 %v58_v20, %v57_v19  ;;  %v245_v24 = vpack.c.bf16 %v60_v23, %v59_v22  ;;  %v44_v25 = vld [vmem:[#allocation2 + $0x8] sm:$0xff]  ;;  %v163_v26 = vld [vmem:[%s401_s2] ss:$0 sm:$0xff] }
  0x2d   :  { %p306_p6 = pnand %p305_p5, %p299_p2 }
  0x2e   :  { %224 = vmatpush3.bf16.msra.mxu0 %v221_v5 }
  0x2f   :  { %226 = vmatprep.subr.bf16.mxu0 %v225_v8 }
  0x32   :  { %228 = vmatpush3.bf16.msra.mxu0 %v225_v8 }
  0x33   :  { %230 = vmatprep.subr.bf16.mxu0 %v229_v12 }
  0x36   :  { %232 = vmatpush3.bf16.msra.mxu0 %v229_v12 }
  0x37   :  { %234 = vmatprep.subr.bf16.mxu0 %v233_v15 }
  0x3a   :  { %236 = vmatpush3.bf16.msra.mxu0 %v233_v15 }
  0x3b   :  { %238 = vmatprep.subr.bf16.mxu0 %v237_v18 }
  0x3e   :  { %240 = vmatpush3.bf16.msra.mxu0 %v237_v18 }
  0x3f   :  { %242 = vmatprep.subr.bf16.mxu0 %v241_v21 }
  0x42   :  { %244 = vmatpush3.bf16.msra.mxu0 %v241_v21 }
  0x43   :  { %246 = vmatprep.subr.bf16.mxu0 %v245_v24 }
  0x46   :  { %248 = vmatpush3.bf16.msra.mxu0 %v245_v24 }
  0x49   :  { %215 = vmatmul.mubr.f32.vlgmr.msra.gmra.mrb[0].mxu0 %v44_v25 }
 0x11c   :  { %v216_v27 = vpop.f32.mrb[0].mxu0 }
 0x11d   :  { %v140_v28 = vadd.f32 %v216_v27, %v163_v26  ;;  %v134_v29 = vpop.f32.mrb[1].mxu0 }
 0x11e   :  { %v135_v30 = vadd.f32 %v163_v26, %v134_v29 }
 0x11f   :  { %144 = vst [vmem:[#allocation7 + $0x8] sm:$0xff] %v140_v28 }
 0x120   :  { %143 = vst [vmem:[#allocation7] sm:$0xff] %v135_v30 }
 0x121   :  { %309 = shalt.err (!%p306_p6)
}
 0x122   :  { %s310_s2 = scalar_lea.hbm %s402_s3, 256 }
 0x123   :  { %p311_p7 = scmp.ne.s32.totalorder %s402_s3, %s310_s2  ;;  %p314_p8 = scmp.lt.u32.totalorder %s310_s2, %s402_s3 }
 0x125   :  { %p316_p9 = pnand %p314_p8, %p311_p7 }
 0x127   :  { %319 = shalt.err (!%p316_p9)
}
 0x128   :  { %156 = dma.vmem_to_hbm [thread:$0]  %s151_s12, 256, %s402_s3, [#allocation4], %s327_s22, %s327_s22, %s328_s23  }
 0x129   :  { %324 = dma.done.wait [#allocation4], 256  }
 0x12a   :  { %325 = vsyncadd [#allocation4], 4294967040 }
 0x12b   :  { %160 = vsyncpa [#allocation3], 1 }
 0x12c   :  { %161 = vsyncpa [#allocation6], 1 }
 0x12d   :  { %162 = vsyncpa [#allocation4], 1 }

</bundles_post_ra>
